<compile_context>
chip_gen: v6e
topology: v6e:2x2x1
jax: 0.10.0
libtpu: 0.0.40
codegen_flags: <defaults>
</compile_context>

<pallas_src>
import functools

import jax
import jax.numpy as jnp
from jax import lax
from jax.experimental import pallas as pl
from jax.experimental.pallas import tpu as pltpu

_LANE = 128
_MiB = 1024 * 1024


def _round_up(x, m):
    return -(-x // m) * m


# ----------------------------------------------------------------------------
# Kernel 1: linear projection  y = x @ W^T + b   (bf16 MXU operands, f32 acc)
# ----------------------------------------------------------------------------
def _proj_kernel(x_ref, wt_ref, b_ref, out_ref):
    x = x_ref[0].astype(jnp.bfloat16)
    y = jnp.dot(x, wt_ref[...], preferred_element_type=jnp.float32) + b_ref[...]
    out_ref[0] = y.astype(out_ref.dtype)


def _project(x, w_t, bias, row_tile, cparams):
    """x: (B, R, H) -> (B, R, H) bf16 = x @ w_t + bias, tiled over rows."""
    B, R, H = x.shape
    return pl.pallas_call(
        _proj_kernel,
        out_shape=jax.ShapeDtypeStruct((B, R, H), jnp.bfloat16),
        grid=(B, R // row_tile),
        in_specs=[pl.BlockSpec((1, row_tile, H), lambda b, r: (b, r, 0)),
                  pl.BlockSpec((H, H), lambda b, r: (0, 0)),
                  pl.BlockSpec((1, H), lambda b, r: (0, 0))],
        out_specs=pl.BlockSpec((1, row_tile, H), lambda b, r: (b, r, 0)),
        compiler_params=cparams,
    )(x, w_t, bias)


# ----------------------------------------------------------------------------
# Kernel 2: scores + softmax over the (padded) key axis
# ----------------------------------------------------------------------------
def _softmax_store(scores, valid_len, out_ref):
    m = jnp.max(scores, axis=-1, keepdims=True)
    e = jnp.exp(scores - m)
    if valid_len is not None:
        # Exclude padded key columns from the normalizer (fully-masked rows
        # then normalize to 1/S, matching torch, not 1/S_pad).
        col = lax.broadcasted_iota(jnp.int32, scores.shape, 1)
        e = jnp.where(col < valid_len, e, 0.0)
    denom = jnp.sum(e, axis=-1, keepdims=True)
    # approx reciprocal -> EUP slot; rows sum to 1 within ~1e-3.
    out_ref[0] = (e * pl.reciprocal(denom, approx=True)).astype(out_ref.dtype)


def _attn_kernel_nomask(qp_ref, kp_ref, out_ref, *, scale, valid_len):
    # Contract on the hidden dim directly (no explicit K transpose).
    scores = lax.dot_general(qp_ref[0], kp_ref[0], (((1,), (1,)), ((), ())),
                             preferred_element_type=jnp.float32) * scale
    if valid_len is not None:
        col = lax.broadcasted_iota(jnp.int32, scores.shape, 1)
        scores = jnp.where(col < valid_len, scores, jnp.float32(-1e9))
    _softmax_store(scores, valid_len, out_ref)


def _attn_kernel_mask(qp_ref, kp_ref, m_ref, out_ref, *, scale, valid_len):
    scores = lax.dot_general(qp_ref[0], kp_ref[0], (((1,), (1,)), ((), ())),
                             preferred_element_type=jnp.float32) * scale
    # masked_fill(mask == 0, -1e9); padded key columns are 0 in the int8 mask.
    scores = jnp.where(m_ref[0] != 0, scores, jnp.float32(-1e9))
    _softmax_store(scores, valid_len, out_ref)


# ----------------------------------------------------------------------------
# Generation-aware tiling / VMEM sizing
# ----------------------------------------------------------------------------
def _vmem_capacity_bytes():
    try:
        return int(pltpu.get_tpu_info().vmem_capacity_bytes)
    except Exception:
        return 64 * _MiB          # conservative (v7x-sized) fallback


def _attn_step_bytes(q_tile, s_pad, h, masked, out_itemsize):
    return (2 * q_tile * s_pad * out_itemsize        # out tile, double-buffered
            + (2 * q_tile * s_pad if masked else 0)  # int8 mask tile, double-buffered
            + 2 * q_tile * s_pad * 4                 # two live f32 slabs (scores, exp)
            + 2 * s_pad * h * 2                      # K_proj tile, bf16 double-buffered
            + 2 * q_tile * h * 2)                    # Q_proj tile, bf16 double-buffered


def _pick_tiling(S, s_pad, h, masked, out_itemsize):
    cap = _vmem_capacity_bytes()
    if cap >= 100 * _MiB:          # v5e / v6e: 128 MiB physical VMEM
        budget, limit_cap = 48 * _MiB, 96 * _MiB
    else:                          # v7x: 64 MiB physical VMEM
        budget, limit_cap = 20 * _MiB, 48 * _MiB

    # 32-row alignment keeps int8 mask tiles sublane-aligned and f32/bf16
    # tiles happy; for small S this avoids padding the query axis to 128.
    q_cap = _round_up(S, 32)
    for cand in (1024, 512, 256, 128):
        q_tile = min(cand, q_cap)
        sb = _attn_step_bytes(q_tile, s_pad, h, masked, out_itemsize)
        if sb <= budget:
            vmem_limit = int(min(limit_cap, max(32 * _MiB, 2 * sb)))
            return q_tile, vmem_limit
    # Hard guard (review): do not silently return an over-budget tile.
    # TODO(synk): implement flash-style key-dim tiling for this regime.
    raise ValueError(
        f"similarity_attention: S={S} (padded {s_pad}) x H={h} exceeds the "
        f"{budget // _MiB} MiB VMEM tiling budget even at a 128-row query "
        "tile; key-dimension tiling is not implemented yet.")


# ----------------------------------------------------------------------------
# Wrapper
# ----------------------------------------------------------------------------
def similarity_attention(query, key, value, params, mask=None,
                         out_dtype=jnp.float32):
    """query/key/value: (B, S, H). mask: None or broadcastable to (B, S, S)
    (nonzero = keep, 0 = masked). Returns (attention_weights, attention_weights)
    of shape (B, S, S), like the torch module (float32 by default)."""
    del value  # unused by the reference forward (as in the PyTorch module)
    B, S, H = query.shape
    masked = mask is not None

    s_pad = _round_up(S, _LANE)                     # key/score axis, lane-dense
    out_itemsize = jnp.dtype(out_dtype).itemsize
    q_tile, vmem_limit = _pick_tiling(S, s_pad, H, masked, out_itemsize)
    s_q = _round_up(S, q_tile)                      # query axis (>= S, often == S)

    cparams = pltpu.CompilerParams(
        dimension_semantics=("parallel", "parallel"),   # shards over both v7x TCs
        vmem_limit_bytes=vmem_limit)

    # Pad inputs only when needed (no padding at all when S % 128 == 0).
    q_in = query if s_q == S else jnp.pad(query, ((0, 0), (0, s_q - S), (0, 0)))
    k_in = key if s_pad == S else jnp.pad(key, ((0, 0), (0, s_pad - S), (0, 0)))

    # torch Linear stores W as (out, in) and computes x @ W^T + b.
    wq_t = params["W_q"]["weight"].T.astype(jnp.bfloat16)
    wk_t = params["W_k"]["weight"].T.astype(jnp.bfloat16)
    bq = params["W_q"]["bias"].reshape(1, H).astype(jnp.float32)
    bk = params["W_k"]["bias"].reshape(1, H).astype(jnp.float32)

    # Hoisted projections: each Q/K row is projected exactly once (K is no
    # longer re-projected for every query tile).
    k_tile = 512 if s_pad % 512 == 0 else (256 if s_pad % 256 == 0 else 128)
    q_proj = _project(q_in, wq_t, bq, q_tile, cparams)      # (B, s_q,  H) bf16
    k_proj = _project(k_in, wk_t, bk, k_tile, cparams)      # (B, s_pad, H) bf16

    scale = 1.0 / (H ** 0.5)
    valid_len = S if s_pad > S else None
    grid = (B, s_q // q_tile)

    qp_spec = pl.BlockSpec((1, q_tile, H), lambda b, qi: (b, qi, 0))
    kp_spec = pl.BlockSpec((1, s_pad, H), lambda b, qi: (b, 0, 0))
    o_spec = pl.BlockSpec((1, q_tile, s_pad), lambda b, qi: (b, qi, 0))
    out_shape = jax.ShapeDtypeStruct((B, s_q, s_pad), out_dtype)

    if masked:
        # TODO(synk): for structured masks (causal / padding lengths) generate
        # the mask in-kernel from broadcasted_iota or SMEM lengths instead of
        # streaming a dense (B, S, S) int8 tensor from HBM.
        mask_i8 = (jnp.broadcast_to(mask, (B, S, S)) != 0).astype(jnp.int8)
        if s_q > S or s_pad > S:
            mask_i8 = jnp.pad(mask_i8, ((0, 0), (0, s_q - S), (0, s_pad - S)))
        m_spec = pl.BlockSpec((1, q_tile, s_pad), lambda b, qi: (b, qi, 0))
        kernel = functools.partial(_attn_kernel_mask, scale=scale,
                                   valid_len=valid_len)
        attn_p = pl.pallas_call(
            kernel, out_shape=out_shape, grid=grid,
            in_specs=[qp_spec, kp_spec, m_spec], out_specs=o_spec,
            compiler_params=cparams,
        )(q_proj, k_proj, mask_i8)
    else:
        kernel = functools.partial(_attn_kernel_nomask, scale=scale,
                                   valid_len=valid_len)
        attn_p = pl.pallas_call(
            kernel, out_shape=out_shape, grid=grid,
            in_specs=[qp_spec, kp_spec], out_specs=o_spec,
            compiler_params=cparams,
        )(q_proj, k_proj)

    if s_q == S and s_pad == S:
        attn = attn_p        # S is 128-aligned: no padding, no extra HBM pass
    else:
        # TODO(synk): for large non-128-aligned S this slice is an extra HBM
        # pass; callers that can consume the padded buffer should use attn_p.
        attn = attn_p[:, :S, :S]
    return attn, attn


def init_params(key, hidden_dim):
    """Deterministic init mimicking nn.Linear default (uniform(-1/sqrt(H), 1/sqrt(H)))."""
    bound = 1.0 / (hidden_dim ** 0.5)
    keys = jax.random.split(key, 6)

    def lin(kw, kb):
        w = jax.random.uniform(kw, (hidden_dim, hidden_dim),
                               minval=-bound, maxval=bound, dtype=jnp.float32)
        b = jax.random.uniform(kb, (hidden_dim,),
                               minval=-bound, maxval=bound, dtype=jnp.float32)
        return {"weight": w, "bias": b}

    return {
        "W_q": lin(keys[0], keys[1]),
        "W_k": lin(keys[2], keys[3]),
        "W_v": lin(keys[4], keys[5]),   # present in the module, unused in forward
    }


if __name__ == "__main__":
    B, S, H = 2, 8, 32
    root = jax.random.PRNGKey(0)
    k_params, k_q, k_k, k_v = jax.random.split(root, 4)

    params = init_params(k_params, H)
    query = jax.random.normal(k_q, (B, S, H), dtype=jnp.float32)
    key_in = jax.random.normal(k_k, (B, S, H), dtype=jnp.float32)
    value = jax.random.normal(k_v, (B, S, H), dtype=jnp.float32)

    # Pure-JAX f32 reference scores.
    Qr = query @ params["W_q"]["weight"].T + params["W_q"]["bias"]
    Kr = key_in @ params["W_k"]["weight"].T + params["W_k"]["bias"]
    scores_ref = jnp.einsum("bqh,bkh->bqk", Qr, Kr) / (H ** 0.5)

    # --- No-mask path (no mask tensor materialized at all) ---
    attn_w, attn_w2 = similarity_attention(query, key_in, value, params, mask=None)
    jax.block_until_ready(attn_w)
    ref = jax.nn.softmax(scores_ref, axis=-1)
    assert attn_w.shape == (B, S, S)
    assert jnp.allclose(attn_w, ref, atol=2e-2), "no-mask mismatch vs reference"
    assert jnp.allclose(jnp.sum(attn_w, axis=-1), 1.0, atol=5e-3), "rows not normalized"

    # --- Masked (causal) path, mask streamed as int8 ---
    causal = jnp.tril(jnp.ones((S, S), dtype=jnp.int32))
    mask = jnp.broadcast_to(causal, (B, S, S))
    attn_m, _ = similarity_attention(query, key_in, value, params, mask=mask)
    jax.block_until_ready(attn_m)
    ref_m = jax.nn.softmax(jnp.where(mask == 0, -1e9, scores_ref), axis=-1)
    assert attn_m.shape == (B, S, S)
    assert jnp.allclose(attn_m, ref_m, atol=2e-2), "masked mismatch vs reference"

    print("KERNEL_OK")
</pallas_src>

<mosaic_0001>
module attributes {stable_mosaic.version = 11 : i64} {
  func.func @_proj_kernel(%arg0: i32, %arg1: i32, %arg2: memref<1x32x32xf32, #tpu.memory_space<vmem>>, %arg3: memref<32x32xbf16, #tpu.memory_space<vmem>>, %arg4: memref<1x32xf32, #tpu.memory_space<vmem>>, %arg5: memref<1x32x32xbf16, #tpu.memory_space<vmem>>) attributes {dimension_semantics = [#tpu.dimension_semantics<parallel>, #tpu.dimension_semantics<parallel>], iteration_bounds = array<i64: 2, 1>, scalar_prefetch = 0 : i64, scratch_operands = 0 : i64, tpu.core_type = #tpu.core_type<tc>, window_params = [{transform_indices = @transform_0, window_bounds = array<i64: 1, 32, 32>}, {pipeline_mode = #tpu.pipeline_mode<synchronous>, transform_indices = @transform_1, window_bounds = array<i64: 32, 32>}, {pipeline_mode = #tpu.pipeline_mode<synchronous>, transform_indices = @transform_2, window_bounds = array<i64: 1, 32>}, {transform_indices = @transform_3, window_bounds = array<i64: 1, 32, 32>}]} {
    %c0 = arith.constant 0 : index
    %c0_0 = arith.constant 0 : index
    %c0_1 = arith.constant 0 : index
    %0 = vector.load %arg2[%c0, %c0_0, %c0_1] : memref<1x32x32xf32, #tpu.memory_space<vmem>>, vector<1x32x32xf32>
    %1 = vector.shape_cast %0 : vector<1x32x32xf32> to vector<32x32xf32>
    %2 = arith.truncf %1 : vector<32x32xf32> to vector<32x32xbf16>
    %c0_2 = arith.constant 0 : index
    %c0_3 = arith.constant 0 : index
    %3 = vector.load %arg3[%c0_2, %c0_3] : memref<32x32xbf16, #tpu.memory_space<vmem>>, vector<32x32xbf16>
    %cst = arith.constant dense<0.000000e+00> : vector<32x32xf32>
    %4 = tpu.matmul %2, %3, %cst {dimension_numbers = #tpu.dot_dimension_numbers<[1], [0], [0], [1], [0, 0, 1, 1], [], []>} : vector<32x32xbf16>, vector<32x32xbf16>, vector<32x32xf32> -> vector<32x32xf32>
    %c0_4 = arith.constant 0 : index
    %c0_5 = arith.constant 0 : index
    %5 = vector.load %arg4[%c0_4, %c0_5] : memref<1x32xf32, #tpu.memory_space<vmem>>, vector<1x32xf32>
    %6 = vector.broadcast %5 : vector<1x32xf32> to vector<32x32xf32>
    %7 = arith.addf %4, %6 : vector<32x32xf32>
    %8 = arith.truncf %7 : vector<32x32xf32> to vector<32x32xbf16>
    %c0_6 = arith.constant 0 : index
    %c0_7 = arith.constant 0 : index
    %c0_8 = arith.constant 0 : index
    %9 = vector.load %arg5[%c0_6, %c0_7, %c0_8] : memref<1x32x32xbf16, #tpu.memory_space<vmem>>, vector<1x32x32xbf16>
    %10 = vector.shape_cast %9 : vector<1x32x32xbf16> to vector<32x32xbf16>
    %11 = vector.shape_cast %8 : vector<32x32xbf16> to vector<1x32x32xbf16>
    tpu.vector_store %arg5[%c0_6, %c0_7, %c0_8], %11 {strides = array<i32>} : memref<1x32x32xbf16, #tpu.memory_space<vmem>>, vector<1x32x32xbf16>,
    return
  }
  func.func @transform_0(%arg0: i32, %arg1: i32) -> (i32, i32, i32) {
    %c0_i32 = arith.constant 0 : i32
    %c0_i32_0 = arith.constant 0 : i32
    return %arg0, %arg1, %c0_i32 : i32, i32, i32
  }
  func.func @transform_1(%arg0: i32, %arg1: i32) -> (i32, i32) {
    %c0_i32 = arith.constant 0 : i32
    %c0_i32_0 = arith.constant 0 : i32
    %c0_i32_1 = arith.constant 0 : i32
    return %c0_i32, %c0_i32_0 : i32, i32
  }
  func.func @transform_2(%arg0: i32, %arg1: i32) -> (i32, i32) {
    %c0_i32 = arith.constant 0 : i32
    %c0_i32_0 = arith.constant 0 : i32
    %c0_i32_1 = arith.constant 0 : i32
    return %c0_i32, %c0_i32_0 : i32, i32
  }
  func.func @transform_3(%arg0: i32, %arg1: i32) -> (i32, i32, i32) {
    %c0_i32 = arith.constant 0 : i32
    %c0_i32_0 = arith.constant 0 : i32
    return %arg0, %arg1, %c0_i32 : i32, i32, i32
  }
}

</mosaic_0001>

<bundles_post_ra>
// kernel: tpu_custom_call.1
= control target key start
LH: loop header
LB: loop body
LE: loop exit
PB: predicated region body
PF: predicated region fallthrough
CT: control target
= control target key end

     0   :  { %8 = vsyncpa [#allocation3], 0  ;;  %s927_s0 = inlined_call_operand.hbm [shape: f32[2,32,32], index: 0, kind: input, shape index: {}]   ;;  %s928_s1 = inlined_call_operand.hbm [shape: bf16[32,32], index: 1, kind: input, shape index: {}]   ;;  %s929_s2 = inlined_call_operand.vmem [shape: f32[1,32], index: 2, kind: input, shape index: {}]   ;;  %s930_s3 = inlined_call_operand.hbm [shape: bf16[2,32,32], index: 3, kind: output, shape index: {}]  }
   0x1   :  { %10 = vsyncpa [#allocation3 + $0x1], 0 }
   0x2   :  { %11 = vsyncpa [#allocation6], 0 }
   0x3   :  { %12 = vsyncpa [#allocation4], 0 }
   0x4   :  { %14 = vsyncpa [#allocation4 + $0x1], 0  ;;  %s738_s12 = smov 0   ;;  %s740_s13 = smov 0  }
   0x5   :  { %s742_s14 = smov 0   ;;  %s744_s15 = smov 0  }
   0x6   :  { %s746_s16 = smov 0   ;;  %s748_s17 = smov 0  }
   0x7 LB: > { %s444_s18 = sadd.s32 4294967295, %s707_s17   ;;  %s445_s19 = sadd.s32 4294967294, %s707_s17   ;;  %s707_s17 = sphi %s748_s17, %s20_s17   ;;  %s703_s16 = sphi %s746_s16, %s948_s16   ;;  %s699_s15 = sphi %s744_s15, %s947_s15   ;;  %s695_s14 = sphi %s742_s14, %s946_s14   ;;  %s691_s13 = sphi %s740_s13, %s945_s13   ;;  %s687_s12 = sphi %s738_s12, %s944_s12  }
   0x8   : > { %p54_p0 = scmp.ne.s32.totalorder %s691_s13, %s687_s12  ;;  %p772_p1 = scmp.eq.s32.totalorder %s444_s18, 0 }
   0x9   : > { %p776_p2 = scmp.eq.s32.totalorder %s444_s18, 1  ;;  %p128_p3 = scmp.eq.s32.totalorder %s445_s19, 1 }
   0xa   : > { %p782_p4 = por %p772_p1, %p54_p0  ;;  %p446_p5 = scmp.ge.s32.totalorder %s707_s17, 1 }
   0xb   : > { %p787_p6 = por %p128_p3, %p54_p0  ;;  %p135_p7 = scmp.lt.s32.totalorder %s707_s17, 3 }
   0xc   : > { %s934_s22 = scalar_select %p782_p4, 1, 0 }
   0xd   : > { %s935_s23 = scalar_select %p787_p6, 1, 0 }
   0xe   : > { %p792_p8 = pnand %p446_p5, %p135_p7  ;;  %s709_s25 = smov [#allocation5]  }
   0xf   : > { %s147_s26 = sshll.u32 %s709_s25, 4  ;;  %s32_s28 = sadd.s32 1, %s703_s16  ;;  %s148_s26 = int_to_ptr.vmem [resolvable:$true] %s147_s26 }
  0x10   : > { %p496_p9 = pneg %p792_p8  ;;  %s580_s29 = scalar_lea.vmem %s148_s26, 256 }
  0x11   : > { %p581_p13 = scmp.ne.s32.totalorder %s148_s26, %s580_s29  ;;  %p588_p5 = scmp.lt.s32.totalorder %s148_s26, %s148_s26 }
  0x12   : > { %p801_p11 = pnand %p496_p9, %p772_p1  ;;  %p589_p7 = scmp.lt.s32.totalorder %s580_s29, %s580_s29 }
  0x14   : > { %p571_p12 = pneg %p801_p11  ;;  %p590_p6 = por %p589_p7, %p588_p5 }
  0x16   : > { %p583_p0 = pnand %p581_p13, %p571_p12 }
  0x18   : > { %p584_p3 = pneg %p583_p0 }
  0x1a   : > { %p591_p4 = pnand %p590_p6, %p584_p3 }
  0x1c   : > { %594 = shalt.err (!%p591_p4)
}
  0x1d   : > { %s710_s30 = smov 64   ;;  %s711_s4 = smov 4  }
  0x1e   : > { %499 = dma.hbm_to_vmem [thread:$0]  (!%p801_p11), %s928_s1, 256, %s148_s26, [#allocation6], %s710_s30, %s710_s30, %s711_s4  }
  0x1f   : > { %p34_p6 = scmp.ge.s32.totalorder %s32_s28, 2  ;;  %s41_s7 = sadd.s32 1, %s695_s14 }
  0x20   : > { %p48_p4 = scmp.ne.s32.totalorder %s695_s14, %s691_s13  ;;  %p49_p9 = scmp.eq.s32.totalorder %s707_s17, 0 }
  0x21   : > { %s950_s28 = smov (%p34_p6, %s32_s28), 0  ;;  %p509_p0 = scmp.lt.s32.totalorder %s707_s17, 2 }
  0x22   : > { %p819_p12 = por %p49_p9, %p48_p4  ;;  %p825_p13 = por %p776_p2, %p48_p4 }
  0x23   : > { %s36_s10 = ssub.s32 %s703_s16, %s950_s28  ;;  %s164_s11 = sand.u32 1, %s695_s14  }
  0x24   : > { %p39_p11 = scmp.eq.s32.totalorder %s36_s10, 0  ;;  %s449_s18 = sshll.u32 %s164_s11, 5 }
  0x25   : > { %s470_s25 = sshll.u32 %s703_s16, 9  ;;  %s168_s30 = scalar_lea.vmem [#allocation2], %s449_s18 }
  0x26   : > { %s834_s19 = scalar_select %p39_p11, %s695_s14, %s41_s7  }
  0x27   : > { %s176_s29 = scalar_lea.hbm %s927_s0, %s470_s25  ;;  %s177_s4 = sshll.u32 %s168_s30, 4  ;;  %s178_s4 = int_to_ptr.vmem [resolvable:$true] %s177_s4 }
  0x28   : > { %p842_p2 = pnand %p509_p0, %p819_p12  ;;  %s165_s5 = scalar_lea.sflag [#allocation3], %s164_s11 }
  0x29   : > { %s608_s6 = scalar_lea.vmem %s178_s4, 512  ;;  %s712_s7 = smov [#allocation2]  }
  0x2a   : > { %p597_p3 = pneg %p842_p2  ;;  %p609_p5 = scmp.ne.s32.totalorder %s178_s4, %s608_s6 }
  0x2b   : > { %s613_s10 = sshll.u32 %s712_s7, 4  ;;  %s614_s10 = int_to_ptr.vmem [resolvable:$false] %s613_s10 }
  0x2c   : > { %p611_p7 = pnand %p609_p5, %p597_p3  ;;  %s615_s25 = scalar_lea.vmem %s614_s10, 1024 }
  0x2d   : > { %p616_p4 = scmp.lt.s32.totalorder %s178_s4, %s614_s10  ;;  %p617_p9 = scmp.lt.s32.totalorder %s615_s25, %s608_s6 }
  0x2e   : > { %p612_p6 = pneg %p611_p7 }
  0x2f   : > { %p618_p11 = por %p617_p9, %p616_p4 }
  0x31   : > { %p619_p10 = pnand %p618_p11, %p612_p6 }
  0x33   : > { %622 = shalt.err (!%p619_p10)
}
  0x34   : > { %s713_s8 = smov 128   ;;  %s714_s18 = smov 8  }
  0x35   : > { %503 = dma.hbm_to_vmem [thread:$0]  (!%p842_p2), %s176_s29, 512, %s178_s4, %s165_s5, %s713_s8, %s713_s8, %s714_s18  }
  0x36   : > { %189 = sbr.rel (%p792_p8) target bundleno = 288 (0x120), region = 32  ;;  %s853_s11 = sand.u32 (!%p792_p8), 1, %s691_s13  }
  0x37   : > { %s453_s26 = sshll.u32 (!%p792_p8), %s853_s11, 5  ;;  %s192_s27 = scalar_lea.sflag (!%p792_p8), [#allocation3], %s853_s11 }
  0x38   : > { %s195_s30 = scalar_lea.vmem (!%p792_p8), [#allocation2], %s453_s26  ;;  %p941_p12 = scmp.ne.s32.totalorder (!%p792_p8), %s934_s22, 0 }
  0x3b   : > { %674 = dma.done.wait (%p941_p12), %s192_s27, 512  }
  0x3c   : > { %676 = vsyncadd (%p941_p12), %s192_s27, 4294966784 }
  0x3d   : > { %678 = dma.done.wait (%p772_p1), [#allocation6], 256  }
  0x3e   : > { %680 = vsyncadd (%p772_p1), [#allocation6], 4294967040  ;;  %v567_v0 = vld [vmem:[#allocation5 + $0x8] sm:$0xff]   ;;  %v568_v1 = vld [vmem:[#allocation5] sm:$0xff]   ;;  %vm254_vm0 = vcmask 261120   ;;  %s455_s24 = sshll.u32 %s853_s11, 4 }
  0x3f   : > { %480 = vmatprep.subr.bf16.mxu0 %v567_v0  ;;  %v225_v2 = vld [vmem:[%s195_s30] sm:$0xff]  ;;  %v226_v3 = vld [vmem:[%s195_s30 + $0x8] sm:$0xff]  ;;  %v227_v5 = vld [vmem:[%s195_s30 + $0x10] sm:$0xff]  ;;  %vm326_vm1 = vcmask 257024   ;;  %s221_s29 = scalar_lea.vmem [#allocation7], %s455_s24  ;;  %s475_s21 = sshll.u32 %s699_s15, 8 }
  0x40   : > { %481 = vmatpush3.bf16.msra.mxu0 %v567_v0  ;;  %v229_v4 = vpack.c.bf16 %v226_v3, %v225_v2  ;;  %v228_v6 = vld [vmem:[%s195_s30 + $0x18] sm:$0xff]  ;;  %v456_v8 = vld [vmem:[%s929_s2] ss:$0 sm:$0xff]  ;;  %s347_s4 = sshll.u32 %s221_s29, 4  ;;  %s877_s7 = scalar_lea.hbm %s930_s3, %s475_s21  ;;  %s871_s4 = int_to_ptr.vmem [resolvable:$true] %s347_s4 }
  0x41   : > { %482 = vmatprep.subr.bf16.mxu0 %v568_v1  ;;  %v230_v7 = vpack.c.bf16 %v228_v6, %v227_v5  ;;  %s332_s15 = scalar_lea.sflag [#allocation4], %s853_s11  ;;  %s623_s10 = scalar_lea.vmem %s871_s4, 256 }
  0x42   : > { %484 = vmatprep.mubr.msk.bf16.mxu0 %vm254_vm0, %v229_v4  ;;  %p624_p1 = scmp.ne.s32.totalorder %s871_s4, %s623_s10  ;;  %s715_s25 = smov [#allocation7]  }
  0x43   : > { %s627_s8 = sshll.u32 %s715_s25, 4  ;;  %s628_s8 = int_to_ptr.vmem [resolvable:$false] %s627_s8 }
  0x44   : > { %483 = vmatpush3.bf16.msra.mxu0 %v568_v1  ;;  %p625_p8 = pnand %p624_p1, %p825_p13  ;;  %s629_s18 = scalar_lea.vmem %s628_s8, 512 }
  0x45   : > { %p630_p0 = scmp.lt.s32.totalorder %s871_s4, %s628_s8  ;;  %p631_p2 = scmp.lt.s32.totalorder %s629_s18, %s623_s10 }
  0x46   : > { %p626_p10 = pneg %p625_p8 }
  0x47   : > { %485 = vmatmul.mubr.msk.bf16.vlgmr.msra.gmra.mxu0 %vm254_vm0, %v230_v7  ;;  %p632_p3 = por %p631_p2, %p630_p0 }
  0x49   : > { %p633_p5 = pnand %p632_p3, %p626_p10 }
 0x107   : > { %v486_v9 = vpop.f32.mrf.mxu0 }
 0x108   : > { %v304_v10 = vadd.f32 %v486_v9, %v456_v8 }
 0x109   : > { %v295_v11 = vpop.f32.mrf.mxu0 }
 0x10a   : > { %v473_v12 = vpack.c.bf16 %v304_v10, %v304_v10  ;;  %v296_v13 = vadd.f32 %v456_v8, %v295_v11 }
 0x10b   : > { %v487_v14 = vpop.f32.mrf.mxu0 }
 0x10c   : > { %329 = vst.msk [vmem:[%s221_s29 + $0x8] sm:$0xf] %vm326_vm1, %v473_v12  ;;  %v471_v15 = vpack.c.bf16 %v296_v13, %v296_v13  ;;  %v307_v16 = vadd.f32 %v487_v14, %v456_v8 }
 0x10d   : > { %v298_v17 = vpop.f32.mrf.mxu0 }
 0x10e   : > { %327 = vst.msk [vmem:[%s221_s29] sm:$0xf] %vm326_vm1, %v471_v15  ;;  %v474_v18 = vpack.c.bf16 %v307_v16, %v307_v16  ;;  %v299_v19 = vadd.f32 %v456_v8, %v298_v17 }
 0x110   : > { %330 = vst.msk [vmem:[%s221_s29 + $0xc] sm:$0xf] %vm326_vm1, %v474_v18  ;;  %v472_v20 = vpack.c.bf16 %v299_v19, %v299_v19 }
 0x112   : > { %328 = vst.msk [vmem:[%s221_s29 + $0x4] sm:$0xf] %vm326_vm1, %v472_v20 }
 0x113   : > { %636 = shalt.err (!%p633_p5)
}
 0x114   : > { %s637_s26 = scalar_lea.hbm %s877_s7, 256  ;;  %s641_s22 = scalar_lea.hbm %s930_s3, 512 }
 0x115   : > { %p638_p7 = scmp.ne.s32.totalorder %s877_s7, %s637_s26  ;;  %p642_p9 = scmp.lt.s32.totalorder %s877_s7, %s930_s3 }
 0x116   : > { %p643_p11 = scmp.lt.s32.totalorder %s641_s22, %s637_s26 }
 0x117   : > { %p639_p6 = pnand %p638_p7, %p825_p13 }
 0x118   : > { %p644_p12 = por %p643_p11, %p642_p9 }
 0x119   : > { %p640_p4 = pneg %p639_p6 }
 0x11b   : > { %p645_p1 = pnand %p644_p12, %p640_p4 }
 0x11d   : > { %648 = shalt.err (!%p645_p1)
}
 0x11e   : > { %s716_s29 = smov 64   ;;  %s717_s21 = smov 4  }
 0x11f   : > { %494 = dma.vmem_to_hbm [thread:$0]  (%p825_p13), %s871_s4, 256, %s877_s7, %s332_s15, %s716_s29, %s716_s29, %s717_s21  }
 0x120 PF: > { %s362_s5 = sand.u32 1, %s687_s12   ;;  %p942_p8 = scmp.ne.s32.totalorder %s935_s23, 0 }
 0x121   : > { %p943_p10 = scmp.ge.s32.totalorder %s707_s17, 2  ;;  %s363_s6 = scalar_lea.sflag [#allocation4], %s362_s5 }
 0x123   : > { %p505_p0 = pnand %p943_p10, %p942_p8 }
 0x125   : > { %p506_p2 = pneg %p505_p0 }
 0x127   : > { %682 = dma.done.wait (%p506_p2), %s363_s6, 256  }
 0x128   : > { %684 = vsyncadd (%p506_p2), %s363_s6, 4294967040  ;;  %s20_s17 = sadd.s32 1, %s707_s17   ;;  %s944_s12 = smov %s691_s13 }
 0x129   : > { %p17_p3 = scmp.ge.s32.totalorder %s20_s17, 4   ;;  %s945_s13 = smov %s695_s14 }
 0x12a   : > { %s946_s14 = smov %s834_s19  ;;  %s947_s15 = smov %s703_s16 }
 0x12b   : > { %s948_s16 = smov %s950_s28  ;;  %19 = sbr.rel (!%p17_p3) target bundleno = 7 (0x7), region = 81 }
 0x130   :  { %368 = vsyncpa [#allocation3], 1 }
 0x131   :  { %370 = vsyncpa [#allocation3 + $0x1], 1 }
 0x132   :  { %371 = vsyncpa [#allocation6], 1 }
 0x133   :  { %372 = vsyncpa [#allocation4], 1 }
 0x134   :  { %374 = vsyncpa [#allocation4 + $0x1], 1 }

</bundles_post_ra>
